<compile_context>
chip_gen: v7x
topology: tpu7x:2x2x1
jax: 0.10.0
libtpu: 0.0.40
codegen_flags: <defaults>
</compile_context>

<pallas_src>
import functools

import jax
import jax.numpy as jnp
from jax import lax
from jax.experimental import pallas as pl
from jax.experimental.pallas import tpu as pltpu


def _round_down(x: int, m: int) -> int:
    return (x // m) * m


def _round_up(x: int, m: int) -> int:
    return ((x + m - 1) // m) * m


def _cdiv(a: int, b: int) -> int:
    return -(-a // b)


def _sparse_prob_kernel(d_ref, out_ref, *, sparsity: int):
    # Working copy only; d_ref is re-read at the end so no second (R, N) f32
    # buffer stays live across the selection loop.
    vals0 = d_ref[...].astype(jnp.float32)
    R, N = vals0.shape

    # Hoisted constants (JAX does not CSE broadcast_in_dim inside loops).
    ones_cols = jnp.ones((N, 128), jnp.float32)        # MXU tie-count operand
    inf = jnp.float32(jnp.inf)

    def select_step(carry):
        vals, sum_top_k, remaining, top_k, found = carry
        # One XLU reduce per step: row minimum among not-yet-removed values.
        m = jnp.min(vals, axis=1, keepdims=True)                        # (R, 1)
        is_min = vals == m                                              # (R, N)
        # Tie multiplicity on the otherwise-idle MXU (instead of a second
        # full-width XLU reduce). All 128 output lanes hold the same count.
        cnt = jnp.dot(is_min.astype(jnp.float32), ones_cols,
                      preferred_element_type=jnp.float32)[:, 0:1]       # (R, 1)
        take = jnp.minimum(cnt, remaining)
        sum_top_k = sum_top_k + take * m
        # If the tie straddles the k-boundary (or the boundary was already
        # reached), this min IS sorted[:, sparsity].
        hit = jnp.logical_and(found == 0.0, cnt > remaining)
        top_k = jnp.where(hit, m, top_k)
        found = jnp.maximum(found, hit.astype(jnp.float32))
        # Remove every tied occurrence at once; gate on remaining > 0.
        vals = jnp.where(jnp.logical_and(is_min, remaining > 0.0), inf, vals)
        remaining = remaining - take
        return vals, sum_top_k, remaining, top_k, found

    zeros = jnp.zeros((R, 1), jnp.float32)
    carry = (vals0, zeros, jnp.full((R, 1), jnp.float32(sparsity)), zeros, zeros)

    # TODO(synk): for sparsity >= ~32 a bitwise radix/threshold select on
    # order-preserving uint32 keys (~32 MXU-counted passes) would beat this
    # O(sparsity) min-selection.
    vals, sum_top_k, remaining, top_k, found = lax.fori_loop(
        0, sparsity, lambda _, c: select_step(c), carry,
        unroll=(sparsity <= 8))

    # Rows whose boundary was never straddled by a tie: sorted[:, sparsity] is
    # the minimum of what remains.
    top_k = jnp.where(found > 0.0, top_k,
                      jnp.min(vals, axis=1, keepdims=True)) + jnp.float32(1e-10)
    denom = jnp.float32(sparsity) * top_k - sum_top_k                   # (R, 1)
    # EUP approx reciprocal + one Newton step -> full f32 accuracy (meets the
    # 1e-5 reference tolerance) while offloading the divide from the VPU.
    inv = pl.reciprocal(denom, approx=True)
    inv = inv * (2.0 - denom * inv)

    d = d_ref[...].astype(jnp.float32)                                  # re-read
    out_ref[...] = jnp.maximum((top_k - d) * inv, 0.0).astype(out_ref.dtype)


def sparse_prob(distances: jax.Array, sparsity: int, *,
                out_dtype=jnp.float32) -> jax.Array:
    n = distances.shape[0]
    assert distances.shape == (n, n)
    assert 0 < sparsity < n

    in_dtype = distances.dtype
    itemsize = jnp.dtype(in_dtype).itemsize
    out_itemsize = jnp.dtype(out_dtype).itemsize
    # Sublane alignment for the input dtype: 8 (f32), 16 (bf16), 32 (int8/fp8).
    align = max(8, 8 * (4 // max(itemsize, 1)))

    # ---- Per-generation VMEM-driven row-tile sizing -------------------------
    try:
        vmem_cap = int(pltpu.get_tpu_info().vmem_capacity_bytes)
    except Exception:                      # conservative (v7x-sized) fallback
        vmem_cap = 64 * 1024 * 1024
    vmem_limit = (vmem_cap * 3) // 4       # ~48 MiB on v7x, ~96 MiB on v5e/v6e

    # Live set per block row: 2x double-buffered input (real itemsize),
    # 2x double-buffered output, ~4 f32 (R, N)-sized working buffers in the
    # body (vals + mask/where temps; the raw tile is no longer held across the
    # loop).  Plus the fixed (N, 128) f32 MXU counting constant.
    bytes_per_row = n * (2 * itemsize + 2 * out_itemsize + 4 * 4)
    ones_bytes = n * 128 * 4
    budget = max(vmem_limit - ones_bytes, align * bytes_per_row)
    max_rows_vmem = max(align, _round_down(budget // bytes_per_row, align))
    max_block = max(align, min(max_rows_vmem, 512))

    # ---- Grid-step count: even and >= 8 where worthwhile (v7x 2-TC balance) -
    steps = max(1, _cdiv(n, max_block))
    if n >= 512:
        steps = max(steps, 8)
    if steps > 1 and steps % 2 == 1:
        steps += 1
    block_rows = max(align, _round_up(_cdiv(n, steps), align))   # <= max_block

    # ---- Wrapper-side row padding (no giant single-block fallback) ----------
    n_rows_pad = _round_up(n, block_rows)
    x = distances
    if n_rows_pad != n:
        x = jnp.pad(x, ((0, n_rows_pad - n), (0, 0)))   # padded rows: don't-care
    grid = (n_rows_pad // block_rows,)

    kernel = functools.partial(_sparse_prob_kernel, sparsity=sparsity)
    cost = pl.CostEstimate(
        flops=(2 * sparsity + 6) * n * n,
        transcendentals=0,
        bytes_accessed=n * n * (itemsize + out_itemsize),
    )
    out = pl.pallas_call(
        kernel,
        out_shape=jax.ShapeDtypeStruct((n_rows_pad, n), out_dtype),
        grid_spec=pl.GridSpec(
            grid=grid,
            in_specs=[pl.BlockSpec((block_rows, n), lambda i: (i, 0))],
            out_specs=pl.BlockSpec((block_rows, n), lambda i: (i, 0)),
        ),
        compiler_params=pltpu.CompilerParams(
            dimension_semantics=("parallel",),
            vmem_limit_bytes=int(vmem_limit),
        ),
        cost_estimate=cost,
    )(x)

    if n_rows_pad != n:
        out = out[:n, :]
    return out


def _reference(distances: jax.Array, sparsity: int) -> jax.Array:
    # Pure-JAX reference mirroring the PyTorch module (verification only).
    s = jnp.sort(distances.astype(jnp.float32), axis=1)
    top_k = s[:, sparsity][:, None] + 1e-10
    sum_top_k = jnp.sum(s[:, :sparsity], axis=1)[:, None]
    prob = (top_k - distances) / (sparsity * top_k - sum_top_k)
    return jnp.maximum(prob, 0.0)


if __name__ == "__main__":
    key = jax.random.PRNGKey(0)
    n = 16
    sparsity = 3
    distances = jax.random.uniform(key, (n, n), dtype=jnp.float32)

    out = sparse_prob(distances, sparsity)
    jax.block_until_ready(out)

    ref = _reference(distances, sparsity)
    assert out.shape == (n, n) and out.dtype == jnp.float32
    assert jnp.allclose(out, ref, atol=1e-5, rtol=1e-5), "mismatch vs reference"

    print("KERNEL_OK")
</pallas_src>

<mosaic_0001>
module attributes {stable_mosaic.version = 11 : i64} {
  func.func @_sparse_prob_kernel(%arg0: i32, %arg1: memref<16x16xf32, #tpu.memory_space<vmem>>, %arg2: memref<16x16xf32, #tpu.memory_space<vmem>>) attributes {dimension_semantics = [#tpu.dimension_semantics<parallel>], iteration_bounds = array<i64: 1>, scalar_prefetch = 0 : i64, scratch_operands = 0 : i64, tpu.core_type = #tpu.core_type<tc>, window_params = [{transform_indices = @transform_0, window_bounds = array<i64: 16, 16>}, {transform_indices = @transform_1, window_bounds = array<i64: 16, 16>}]} {
    %c0 = arith.constant 0 : index
    %c0_0 = arith.constant 0 : index
    %0 = vector.load %arg1[%c0, %c0_0] : memref<16x16xf32, #tpu.memory_space<vmem>>, vector<16x16xf32>
    %cst = arith.constant 1.000000e+00 : f32
    %1 = vector.broadcast %cst : f32 to vector<16x128xf32>
    %cst_1 = arith.constant 0.000000e+00 : f32
    %2 = vector.broadcast %cst_1 : f32 to vector<16x1xf32>
    %cst_2 = arith.constant 3.000000e+00 : f32
    %3 = vector.broadcast %cst_2 : f32 to vector<16x1xf32>
    %cst_3 = arith.constant 0x7F800000 : f32
    %c0_i32 = arith.constant 0 : i32
    %cst_4 = arith.constant dense<0x7F800000> : vector<16xf32>
    %4 = vector.multi_reduction <minimumf>, %0, %cst_4 [1] : vector<16x16xf32> to vector<16xf32>
    %5 = vector.shape_cast %4 : vector<16xf32> to vector<16x1xf32>
    %6 = vector.broadcast %5 : vector<16x1xf32> to vector<16x16xf32>
    %7 = arith.cmpf oeq, %0, %6 : vector<16x16xf32>
    %8 = arith.extui %7 : vector<16x16xi1> to vector<16x16xi32>
    %9 = arith.sitofp %8 : vector<16x16xi32> to vector<16x16xf32>
    %cst_5 = arith.constant dense<0.000000e+00> : vector<16x128xf32>
    %10 = tpu.matmul %9, %1, %cst_5 {dimension_numbers = #tpu.dot_dimension_numbers<[1], [0], [0], [1], [0, 0, 1, 1], [], []>} : vector<16x16xf32>, vector<16x128xf32>, vector<16x128xf32> -> vector<16x128xf32>
    %11 = vector.extract_strided_slice %10 {offsets = [0, 0], sizes = [16, 1], strides = [1, 1]} : vector<16x128xf32> to vector<16x1xf32>
    %12 = arith.minimumf %11, %3 : vector<16x1xf32>
    %13 = arith.mulf %12, %5 : vector<16x1xf32>
    %14 = arith.addf %2, %13 : vector<16x1xf32>
    %cst_6 = arith.constant 0.000000e+00 : f32
    %15 = vector.broadcast %cst_6 : f32 to vector<16x1xf32>
    %16 = arith.cmpf oeq, %2, %15 : vector<16x1xf32>
    %17 = arith.cmpf ogt, %11, %3 : vector<16x1xf32>
    %18 = arith.andi %16, %17 : vector<16x1xi1>
    %19 = arith.select %18, %5, %2 : vector<16x1xi1>, vector<16x1xf32>
    %20 = arith.extui %18 : vector<16x1xi1> to vector<16x1xi32>
    %21 = arith.sitofp %20 : vector<16x1xi32> to vector<16x1xf32>
    %22 = arith.maximumf %2, %21 : vector<16x1xf32>
    %cst_7 = arith.constant 0.000000e+00 : f32
    %23 = vector.broadcast %cst_7 : f32 to vector<16x1xf32>
    %24 = arith.cmpf ogt, %3, %23 : vector<16x1xf32>
    %25 = vector.broadcast %24 : vector<16x1xi1> to vector<16x16xi1>
    %26 = arith.andi %7, %25 : vector<16x16xi1>
    %27 = vector.broadcast %cst_3 : f32 to vector<16x16xf32>
    %28 = arith.select %26, %27, %0 : vector<16x16xi1>, vector<16x16xf32>
    %29 = arith.subf %3, %12 : vector<16x1xf32>
    %c1_i32 = arith.constant 1 : i32
    %cst_8 = arith.constant dense<0x7F800000> : vector<16xf32>
    %30 = vector.multi_reduction <minimumf>, %28, %cst_8 [1] : vector<16x16xf32> to vector<16xf32>
    %31 = vector.shape_cast %30 : vector<16xf32> to vector<16x1xf32>
    %32 = vector.broadcast %31 : vector<16x1xf32> to vector<16x16xf32>
    %33 = arith.cmpf oeq, %28, %32 : vector<16x16xf32>
    %34 = arith.extui %33 : vector<16x16xi1> to vector<16x16xi32>
    %35 = arith.sitofp %34 : vector<16x16xi32> to vector<16x16xf32>
    %cst_9 = arith.constant dense<0.000000e+00> : vector<16x128xf32>
    %36 = tpu.matmul %35, %1, %cst_9 {dimension_numbers = #tpu.dot_dimension_numbers<[1], [0], [0], [1], [0, 0, 1, 1], [], []>} : vector<16x16xf32>, vector<16x128xf32>, vector<16x128xf32> -> vector<16x128xf32>
    %37 = vector.extract_strided_slice %36 {offsets = [0, 0], sizes = [16, 1], strides = [1, 1]} : vector<16x128xf32> to vector<16x1xf32>
    %38 = arith.minimumf %37, %29 : vector<16x1xf32>
    %39 = arith.mulf %38, %31 : vector<16x1xf32>
    %40 = arith.addf %14, %39 : vector<16x1xf32>
    %cst_10 = arith.constant 0.000000e+00 : f32
    %41 = vector.broadcast %cst_10 : f32 to vector<16x1xf32>
    %42 = arith.cmpf oeq, %22, %41 : vector<16x1xf32>
    %43 = arith.cmpf ogt, %37, %29 : vector<16x1xf32>
    %44 = arith.andi %42, %43 : vector<16x1xi1>
    %45 = arith.select %44, %31, %19 : vector<16x1xi1>, vector<16x1xf32>
    %46 = arith.extui %44 : vector<16x1xi1> to vector<16x1xi32>
    %47 = arith.sitofp %46 : vector<16x1xi32> to vector<16x1xf32>
    %48 = arith.maximumf %22, %47 : vector<16x1xf32>
    %cst_11 = arith.constant 0.000000e+00 : f32
    %49 = vector.broadcast %cst_11 : f32 to vector<16x1xf32>
    %50 = arith.cmpf ogt, %29, %49 : vector<16x1xf32>
    %51 = vector.broadcast %50 : vector<16x1xi1> to vector<16x16xi1>
    %52 = arith.andi %33, %51 : vector<16x16xi1>
    %53 = vector.broadcast %cst_3 : f32 to vector<16x16xf32>
    %54 = arith.select %52, %53, %28 : vector<16x16xi1>, vector<16x16xf32>
    %55 = arith.subf %29, %38 : vector<16x1xf32>
    %c2_i32 = arith.constant 2 : i32
    %cst_12 = arith.constant dense<0x7F800000> : vector<16xf32>
    %56 = vector.multi_reduction <minimumf>, %54, %cst_12 [1] : vector<16x16xf32> to vector<16xf32>
    %57 = vector.shape_cast %56 : vector<16xf32> to vector<16x1xf32>
    %58 = vector.broadcast %57 : vector<16x1xf32> to vector<16x16xf32>
    %59 = arith.cmpf oeq, %54, %58 : vector<16x16xf32>
    %60 = arith.extui %59 : vector<16x16xi1> to vector<16x16xi32>
    %61 = arith.sitofp %60 : vector<16x16xi32> to vector<16x16xf32>
    %cst_13 = arith.constant dense<0.000000e+00> : vector<16x128xf32>
    %62 = tpu.matmul %61, %1, %cst_13 {dimension_numbers = #tpu.dot_dimension_numbers<[1], [0], [0], [1], [0, 0, 1, 1], [], []>} : vector<16x16xf32>, vector<16x128xf32>, vector<16x128xf32> -> vector<16x128xf32>
    %63 = vector.extract_strided_slice %62 {offsets = [0, 0], sizes = [16, 1], strides = [1, 1]} : vector<16x128xf32> to vector<16x1xf32>
    %64 = arith.minimumf %63, %55 : vector<16x1xf32>
    %65 = arith.mulf %64, %57 : vector<16x1xf32>
    %66 = arith.addf %40, %65 : vector<16x1xf32>
    %cst_14 = arith.constant 0.000000e+00 : f32
    %67 = vector.broadcast %cst_14 : f32 to vector<16x1xf32>
    %68 = arith.cmpf oeq, %48, %67 : vector<16x1xf32>
    %69 = arith.cmpf ogt, %63, %55 : vector<16x1xf32>
    %70 = arith.andi %68, %69 : vector<16x1xi1>
    %71 = arith.select %70, %57, %45 : vector<16x1xi1>, vector<16x1xf32>
    %72 = arith.extui %70 : vector<16x1xi1> to vector<16x1xi32>
    %73 = arith.sitofp %72 : vector<16x1xi32> to vector<16x1xf32>
    %74 = arith.maximumf %48, %73 : vector<16x1xf32>
    %cst_15 = arith.constant 0.000000e+00 : f32
    %75 = vector.broadcast %cst_15 : f32 to vector<16x1xf32>
    %76 = arith.cmpf ogt, %55, %75 : vector<16x1xf32>
    %77 = vector.broadcast %76 : vector<16x1xi1> to vector<16x16xi1>
    %78 = arith.andi %59, %77 : vector<16x16xi1>
    %79 = vector.broadcast %cst_3 : f32 to vector<16x16xf32>
    %80 = arith.select %78, %79, %54 : vector<16x16xi1>, vector<16x16xf32>
    %81 = arith.subf %55, %64 : vector<16x1xf32>
    %cst_16 = arith.constant 0.000000e+00 : f32
    %82 = vector.broadcast %cst_16 : f32 to vector<16x1xf32>
    %83 = arith.cmpf ogt, %74, %82 : vector<16x1xf32>
    %cst_17 = arith.constant dense<0x7F800000> : vector<16xf32>
    %84 = vector.multi_reduction <minimumf>, %80, %cst_17 [1] : vector<16x16xf32> to vector<16xf32>
    %85 = vector.shape_cast %84 : vector<16xf32> to vector<16x1xf32>
    %86 = arith.select %83, %71, %85 : vector<16x1xi1>, vector<16x1xf32>
    %cst_18 = arith.constant 1.000000e-10 : f32
    %87 = vector.broadcast %cst_18 : f32 to vector<16x1xf32>
    %88 = arith.addf %86, %87 : vector<16x1xf32>
    %cst_19 = arith.constant 3.000000e+00 : f32
    %89 = vector.broadcast %cst_19 : f32 to vector<16x1xf32>
    %90 = arith.mulf %89, %88 : vector<16x1xf32>
    %91 = arith.subf %90, %66 : vector<16x1xf32>
    %92 = tpu.reciprocal %91 {approx = true} : vector<16x1xf32> -> vector<16x1xf32>
    %93 = arith.mulf %91, %92 : vector<16x1xf32>
    %cst_20 = arith.constant 2.000000e+00 : f32
    %94 = vector.broadcast %cst_20 : f32 to vector<16x1xf32>
    %95 = arith.subf %94, %93 : vector<16x1xf32>
    %96 = arith.mulf %92, %95 : vector<16x1xf32>
    %c0_21 = arith.constant 0 : index
    %c0_22 = arith.constant 0 : index
    %97 = vector.load %arg1[%c0_21, %c0_22] : memref<16x16xf32, #tpu.memory_space<vmem>>, vector<16x16xf32>
    %98 = vector.broadcast %88 : vector<16x1xf32> to vector<16x16xf32>
    %99 = arith.subf %98, %97 : vector<16x16xf32>
    %100 = vector.broadcast %96 : vector<16x1xf32> to vector<16x16xf32>
    %101 = arith.mulf %99, %100 : vector<16x16xf32>
    %cst_23 = arith.constant 0.000000e+00 : f32
    %102 = vector.broadcast %cst_23 : f32 to vector<16x16xf32>
    %103 = arith.maximumf %101, %102 : vector<16x16xf32>
    %c0_24 = arith.constant 0 : index
    %c0_25 = arith.constant 0 : index
    %104 = vector.load %arg2[%c0_24, %c0_25] : memref<16x16xf32, #tpu.memory_space<vmem>>, vector<16x16xf32>
    tpu.vector_store %arg2[%c0_24, %c0_25], %103 {strides = array<i32>} : memref<16x16xf32, #tpu.memory_space<vmem>>, vector<16x16xf32>,
    return
  }
  func.func @transform_0(%arg0: i32) -> (i32, i32) {
    %c0_i32 = arith.constant 0 : i32
    %c0_i32_0 = arith.constant 0 : i32
    return %arg0, %c0_i32 : i32, i32
  }
  func.func @transform_1(%arg0: i32) -> (i32, i32) {
    %c0_i32 = arith.constant 0 : i32
    %c0_i32_0 = arith.constant 0 : i32
    return %arg0, %c0_i32 : i32, i32
  }
}

</mosaic_0001>

<bundles_post_ra>
// kernel: tpu_custom_call.1
= control target key start
LH: loop header
LB: loop body
LE: loop exit
PB: predicated region body
PF: predicated region fallthrough
CT: control target
= control target key end

     0   :  { %6 = vsyncpa [#allocation3], 0  ;;  %s733_s0 = inlined_call_operand.hbm [shape: f32[16,16], index: 0, kind: input, shape index: {}]   ;;  %s734_s1 = inlined_call_operand.hbm [shape: f32[16,16], index: 1, kind: output, shape index: {}]  }
   0x1   :  { %7 = vsyncpa [#allocation4], 0  ;;  %s594_s6 = smov [#allocation2]   ;;  %s546_s10 = scalar_lea.hbm %s733_s0, 256 }
   0x2   :  { %s13_s7 = sshll.u32 %s594_s6, 4  ;;  %p547_p0 = scmp.ne.s32.totalorder %s733_s0, %s546_s10  ;;  %s14_s7 = int_to_ptr.vmem [resolvable:$true] %s13_s7 }
   0x3   :  { %p550_p1 = scmp.lt.u32.totalorder %s546_s10, %s733_s0 }
   0x5   :  { %p552_p2 = pnand %p550_p1, %p547_p0 }
   0x7   :  { %555 = shalt.err (!%p552_p2)
}
   0x8   :  { %s556_s15 = scalar_lea.vmem %s14_s7, 256  ;;  %p561_p4 = scmp.lt.s32.totalorder %s14_s7, %s14_s7 }
   0x9   :  { %p557_p3 = scmp.ne.s32.totalorder %s14_s7, %s556_s15  ;;  %p562_p5 = scmp.lt.s32.totalorder %s556_s15, %s556_s15 }
   0xb   :  { %p563_p6 = por %p562_p5, %p561_p4 }
   0xd   :  { %p564_p7 = pnand %p563_p6, %p557_p3 }
   0xf   :  { %567 = shalt.err (!%p564_p7)
}
  0x10   :  { %s595_s16 = smov 128   ;;  %s596_s17 = smov 8  }
  0x11   :  { %19 = dma.hbm_to_vmem [thread:$0]  %s733_s0, 256, %s14_s7, [#allocation3], %s595_s16, %s595_s16, %s596_s17  }
  0x12   :  { %590 = dma.done.wait [#allocation3], 256  }
  0x13   :  { %591 = vsyncadd [#allocation3], 4294967040  ;;  %vm25_vm0 = vcmask 130048   ;;  %v626_v0 = vld [vmem:[#allocation2] sm:$0xff]  ;;  %v628_v1 = vld [vmem:[#allocation2 + $0x8] sm:$0xff]  ;;  %v598_v6 = vmov 0.0  }
  0x14   :  { %v26_v2 = vsel %vm25_vm0, %v626_v0, inf  ;;  %v29_v3 = vsel %vm25_vm0, %v628_v1, inf  ;;  %v597_v4 = vmov 1.0|1.0   ;;  %v599_v14 = vmov 0   ;;  %s600_s0 = smov [#allocation5]  }
  0x15   :  { %27 = vmin.xlane.f32.xlu0 %v26_v2  ;;  %527 = vmatprep.subr.bf16.mxu0 %v597_v4  ;;  %s464_s20 = sshll.u32 %s600_s0, 4  ;;  %s465_s20 = int_to_ptr.vmem [resolvable:$true] %s464_s20 }
  0x16   :  { %529 = vmatprep.subr.bf16.mxu1 %v597_v4  ;;  %528 = vmatpush3.bf16.msra.mxu0 %v597_v4  ;;  %s568_s21 = scalar_lea.vmem %s465_s20, 256  ;;  %p573_p9 = scmp.lt.s32.totalorder %s465_s20, %s465_s20 }
  0x17   :  { %530 = vmatpush3.bf16.msra.mxu1 %v597_v4  ;;  %531 = vmatprep.subr.bf16.mxu0 %v597_v4  ;;  %p569_p8 = scmp.ne.s32.totalorder %s465_s20, %s568_s21  ;;  %p574_p10 = scmp.lt.s32.totalorder %s568_s21, %s568_s21 }
  0x18   :  { %541 = vset.pattern.permute.xlu1 %v599_v14  ;;  %540 = vset.pattern.permute.xlu0 %v599_v14 }
  0x19   :  { %30 = vmin.xlane.f32.xlu0 %v29_v3  ;;  %p575_p11 = por %p574_p10, %p573_p9 }
  0x1b   :  { %p576_p12 = pnand %p575_p11, %p569_p8 }
  0xa2   :  { %v634_v5 = vpop.xlane.xlu0 %27 }
  0xa3   :  { %vm32_vm1 = vcmp.eq.f32.partialorder %v626_v0, %v634_v5 }
  0xa4   :  { %v476_v7 = vsel %vm32_vm1, 1.0, %v598_v6  ;;  %v143_v8 = vsel %vm32_vm1, inf, %v626_v0 }
  0xa5   :  { %510 = vmatprep.mubr.msk.f32.mxu0 %vm25_vm0, %v476_v7  ;;  %v147_v9 = vsel %vm25_vm0, %v143_v8, inf }
  0xa6   :  { %148 = vmin.xlane.f32.xlu1 %v147_v9  ;;  %v31_v10 = vpop.xlane.xlu0 %30 }
  0xa7   :  { %vm33_vm2 = vcmp.eq.f32.partialorder %v628_v1, %v31_v10 }
  0xa8   :  { %v477_v11 = vsel %vm33_vm2, 1.0, %v598_v6  ;;  %v144_v12 = vsel %vm33_vm2, inf, %v628_v1 }
  0xa9   :  { %511 = vmatmul.mubr.msk.f32.vlgmr.msra.gmra.mrb[0].mxu0 %vm25_vm0, %v477_v11  ;;  %v150_v13 = vsel %vm25_vm0, %v144_v12, inf }
  0xaa   :  { %151 = vmin.xlane.f32.xlu1 %v150_v13  ;;  %532 = vmatpush3.bf16.msra.mxu0 %v597_v4 }
 0x133   :  { %v649_v15 = vpop.xlane.xlu1 %148 }
 0x134   :  { %vm153_vm3 = vcmp.eq.f32.partialorder %v143_v8, %v649_v15 }
 0x135   :  { %v482_v16 = vsel %vm153_vm3, 1.0, %v598_v6 }
 0x136   :  { %517 = vmatprep.mubr.msk.f32.mxu1 %vm25_vm0, %v482_v16 }
 0x137   :  { %v656_v17 = vpop.xlane.xlu1 %151 }
 0x138   :  { %vm154_vm4 = vcmp.eq.f32.partialorder %v144_v12, %v656_v17 }
 0x139   :  { %v483_v18 = vsel %vm154_vm4, 1.0, %v598_v6 }
 0x13a   :  { %518 = vmatmul.mubr.msk.f32.vlgmr.msra.gmra.mrb[0].mxu1 %vm25_vm0, %v483_v18 }
 0x17c   :  { %v512_v19 = vpop.f32.mrb[0].mxu0 }
 0x17d   :  { %v120_v20 = vmin.f32 %v512_v19, 3.0  ;;  %v110_v21 = vpop.f32.mrb[1].mxu0  ;;  %vm127_vm8 = vcmp.gt.f32.partialorder %v512_v19, 3.0 }
 0x17e   :  { %v119_v22 = vmin.f32 %v110_v21, 3.0  ;;  %vm126_vm11 = vcmp.gt.f32.partialorder %v110_v21, 3.0  ;;  %v481_v32 = vsel %vm127_vm8, 1.0, %v598_v6  ;;  %v674_v37 = vsel %vm127_vm8, %v31_v10, 0.0 }
 0x17f   :  { %v146_v23 = vsub.f32 3.0, %v120_v20  ;;  %v480_v34 = vsel %vm126_vm11, 1.0, %v598_v6  ;;  %v137_v35 = vmax.f32 %v481_v32, 0.0  ;;  %v122_v39 = vmul.f32 %v120_v20, %v31_v10 }
 0x180   :  { %v145_v24 = vsub.f32 3.0, %v119_v22  ;;  %v136_v36 = vmax.f32 %v480_v34, 0.0  ;;  %v130_v42 = vsel %vm126_vm11, %v634_v5, 0.0  ;;  %v121_v45 = vmul.f32 %v119_v22, %v634_v5 }
 0x181   :  { %vm261_vm5 = vcmp.gt.f32.partialorder %v146_v23, 0.0  ;;  %vm247_vm13 = vcmp.eq.f32.partialorder %v137_v35, 0.0 }
 0x182   :  { %v263_v25 = vsel %vm261_vm5, 1, %v599_v14  ;;  %vm260_vm6 = vcmp.gt.f32.partialorder %v145_v24, 0.0  ;;  %vm246_vm1 = vcmp.eq.f32.partialorder %v136_v36, 0.0 }
 0x183   :  { %268 = vperm.xlu1 %541, %v263_v25   ;;  %v262_v26 = vsel %vm260_vm6, 1, %v599_v14 }
 0x184   :  { %265 = vperm.xlu0 %540, %v262_v26  }
 0x202   :  { %v269_v27 = vpop.permute.xlu1 %268 }
 0x203   :  { %vm271_vm7 = vcmp.eq.s32.totalorder %v269_v27, 1  ;;  %v266_v28 = vpop.permute.xlu0 %265 }
 0x204   :  { %vm273_vm9 = vmand %vm154_vm4, %vm271_vm7  ;;  %vm270_vm10 = vcmp.eq.s32.totalorder %v266_v28, 1 }
 0x205   :  { %v275_v29 = vsel %vm273_vm9, inf, %v144_v12  ;;  %vm272_vm12 = vmand %vm153_vm3, %vm270_vm10 }
 0x206   :  { %v274_v30 = vsel %vm272_vm12, inf, %v143_v8  ;;  %v281_v31 = vsel %vm25_vm0, %v275_v29, inf }
 0x207   :  { %282 = vmin.xlane.f32.xlu0 %v281_v31  ;;  %v278_v33 = vsel %vm25_vm0, %v274_v30, inf }
 0x208   :  { %279 = vmin.xlane.f32.xlu1 %v278_v33 }
 0x20d   :  { %v519_v38 = vpop.f32.mrb[0].mxu1 }
 0x20e   :  { %v241_v40 = vmin.f32 %v519_v38, %v146_v23  ;;  %vm249_vm14 = vcmp.gt.f32.partialorder %v519_v38, %v146_v23  ;;  %v231_v41 = vpop.f32.mrb[1].mxu1 }
 0x20f   :  { %vm678_vm15 = vmand %vm247_vm13, %vm249_vm14  ;;  %v240_v44 = vmin.f32 %v231_v41, %v145_v24  ;;  %vm248_vm2 = vcmp.gt.f32.partialorder %v231_v41, %v145_v24 }
 0x210   :  { %v243_v46 = vmul.f32 %v241_v40, %v656_v17  ;;  %v253_v47 = vsel %vm678_vm15, %v656_v17, %v674_v37  ;;  %v487_v48 = vsel %vm678_vm15, 1.0, %v598_v6  ;;  %vm691_vm3 = vmand %vm246_vm1, %vm248_vm2  ;;  %v277_v58 = vsub.f32 %v146_v23, %v241_v40 }
 0x211   :  { %v259_v50 = vmax.f32 %v137_v35, %v487_v48  ;;  %v242_v51 = vmul.f32 %v240_v44, %v649_v15  ;;  %v252_v52 = vsel %vm691_vm3, %v649_v15, %v130_v42  ;;  %v486_v53 = vsel %vm691_vm3, 1.0, %v598_v6 }
 0x212   :  { %v245_v54 = vadd.f32 %v243_v46, %v122_v39  ;;  %v258_v55 = vmax.f32 %v136_v36, %v486_v53  ;;  %v276_v56 = vsub.f32 %v145_v24, %v240_v44  ;;  %vm392_vm5 = vcmp.gt.f32.partialorder %v277_v58, 0.0 }
 0x213   :  { %v244_v57 = vadd.f32 %v242_v51, %v121_v45  ;;  %v394_v60 = vsel %vm392_vm5, 1, %v599_v14  ;;  %vm378_vm12 = vcmp.eq.f32.partialorder %v259_v50, 0.0 }
 0x214   :  { %vm391_vm4 = vcmp.gt.f32.partialorder %v276_v56, 0.0  ;;  %vm377_vm15 = vcmp.eq.f32.partialorder %v258_v55, 0.0 }
 0x215   :  { %v393_v59 = vsel %vm391_vm4, 1, %v599_v14 }
 0x219   :  { %396 = vperm.xlu1 %541, %v393_v59  }
 0x21d   :  { %399 = vperm.xlu1 %541, %v394_v60  }
 0x294   :  { %v283_v61 = vpop.xlane.xlu0 %282 }
 0x295   :  { %vm285_vm6 = vcmp.eq.f32.partialorder %v275_v29, %v283_v61  ;;  %v280_v62 = vpop.xlane.xlu1 %279 }
 0x296   :  { %vm284_vm7 = vcmp.eq.f32.partialorder %v274_v30, %v280_v62  ;;  %v489_v2 = vsel %vm285_vm6, 1.0, %v598_v6 }
 0x297   :  { %v488_v63 = vsel %vm284_vm7, 1.0, %v598_v6 }
 0x298   :  { %524 = vmatprep.mubr.msk.f32.mxu0 %vm25_vm0, %v488_v63 }
 0x299   :  { %525 = vmatmul.mubr.msk.f32.vlgmr.msra.gmra.mrb[2].mxu0 %vm25_vm0, %v489_v2  ;;  %v397_v3 = vpop.permute.xlu1 %396 }
 0x29a   :  { %vm401_vm8 = vcmp.eq.s32.totalorder %v397_v3, 1 }
 0x29b   :  { %vm403_vm9 = vmand %vm284_vm7, %vm401_vm8 }
 0x29c   :  { %v405_v4 = vsel %vm403_vm9, inf, %v274_v30 }
 0x29d   :  { %v400_v5 = vpop.permute.xlu1 %399  ;;  %v409_v7 = vsel %vm25_vm0, %v405_v4, inf }
 0x29e   :  { %vm402_vm10 = vcmp.eq.s32.totalorder %v400_v5, 1  ;;  %410 = vmin.xlane.f32.xlu1 %v409_v7 }
 0x29f   :  { %vm404_vm11 = vmand %vm285_vm6, %vm402_vm10 }
 0x2a0   :  { %v406_v8 = vsel %vm404_vm11, inf, %v275_v29 }
 0x2a1   :  { %v412_v9 = vsel %vm25_vm0, %v406_v8, inf }
 0x2a2   :  { %413 = vmin.xlane.f32.xlu0 %v412_v9 }
 0x32b   :  { %v411_v25 = vpop.xlane.xlu1 %410 }
 0x32f   :  { %v414_v23 = vpop.xlane.xlu0 %413 }
 0x36c   :  { %v526_v10 = vpop.f32.mrb[2].mxu0 }
 0x36d   :  { %v372_v11 = vmin.f32 %v526_v10, %v277_v58  ;;  %vm380_vm13 = vcmp.gt.f32.partialorder %v526_v10, %v277_v58  ;;  %v362_v12 = vpop.f32.mrb[3].mxu0 }
 0x36e   :  { %vm382_vm14 = vmand %vm378_vm12, %vm380_vm13  ;;  %v371_v13 = vmin.f32 %v362_v12, %v276_v56  ;;  %vm379_vm1 = vcmp.gt.f32.partialorder %v362_v12, %v276_v56 }
 0x36f   :  { %v374_v14 = vmul.f32 %v372_v11, %v283_v61  ;;  %v384_v15 = vsel %vm382_vm14, %v283_v61, %v253_v47  ;;  %v493_v16 = vsel %vm382_vm14, 1.0, %v598_v6  ;;  %vm381_vm2 = vmand %vm377_vm15, %vm379_vm1 }
 0x370   :  { %v390_v17 = vmax.f32 %v259_v50, %v493_v16  ;;  %v373_v18 = vmul.f32 %v371_v13, %v280_v62  ;;  %v383_v19 = vsel %vm381_vm2, %v280_v62, %v252_v52  ;;  %v492_v20 = vsel %vm381_vm2, 1.0, %v598_v6 }
 0x371   :  { %v376_v21 = vadd.f32 %v374_v14, %v245_v54  ;;  %v389_v22 = vmax.f32 %v258_v55, %v492_v20 }
 0x372   :  { %vm408_vm3 = vcmp.gt.f32.partialorder %v390_v17, 0.0  ;;  %v375_v24 = vadd.f32 %v373_v18, %v244_v57 }
 0x373   :  { %vm407_vm4 = vcmp.gt.f32.partialorder %v389_v22, 0.0  ;;  %v416_v26 = vsel %vm408_vm3, %v384_v15, %v414_v23 }
 0x374   :  { %v418_v27 = vadd.f32 1e-10, %v416_v26  ;;  %v415_v28 = vsel %vm407_vm4, %v383_v19, %v411_v25 }
 0x375   :  { %v417_v29 = vadd.f32 1e-10, %v415_v28 }
 0x376   :  { %438 = vperm.xlu0 %540, %v418_v27   ;;  %v420_v30 = vmul.f32 3.0, %v418_v27 }
 0x377   :  { %v419_v31 = vmul.f32 3.0, %v417_v29 }
 0x378   :  { %v422_v32 = vsub.f32 %v420_v30, %v376_v21 }
 0x379   :  { %v421_v33 = vsub.f32 %v419_v31, %v375_v24 }
 0x37a   :  { %542 = vrcp.f32 %v422_v32  ;;  %433 = vperm.xlu0 %540, %v417_v29  }
 0x37b   :  { %544 = vrcp.f32 %v421_v33 }
 0x384   :  { %v543_v6 = vpop.eup %542 }
 0x385   :  { %v545_v34 = vpop.eup %544  ;;  %v426_v36 = vmul.f32 %v543_v6, %v422_v32 }
 0x386   :  { %v425_v35 = vmul.f32 %v545_v34, %v421_v33 }
 0x387   :  { %v428_v39 = vsub.f32 2.0, %v426_v36 }
 0x388   :  { %v427_v37 = vsub.f32 2.0, %v425_v35 }
 0x389   :  { %v430_v40 = vmul.f32 %v543_v6, %v428_v39 }
 0x38a   :  { %v429_v38 = vmul.f32 %v545_v34, %v427_v37 }
 0x38c   :  { %445 = vperm.xlu0 %540, %v429_v38  }
 0x390   :  { %450 = vperm.xlu0 %540, %v430_v40  }
 0x3f5   :  { %v439_v41 = vpop.permute.xlu0 %438 }
 0x3f6   :  { %v442_v46 = vsub.f32 %v439_v41, %v628_v1 }
 0x3f9   :  { %v434_v42 = vpop.permute.xlu0 %433 }
 0x3fa   :  { %v441_v43 = vsub.f32 %v434_v42, %v626_v0 }
 0x40b   :  { %v446_v44 = vpop.permute.xlu0 %445 }
 0x40c   :  { %v453_v45 = vmul.f32 %v446_v44, %v441_v43 }
 0x40e   :  { %v455_v47 = vmax.f32 %v453_v45, 0.0 }
 0x40f   :  { %v451_v48 = vpop.permute.xlu0 %450 }
 0x410   :  { %457 = vst.msk [vmem:[#allocation5] sm:$0xff] %vm25_vm0, %v455_v47  ;;  %v454_v49 = vmul.f32 %v451_v48, %v442_v46 }
 0x412   :  { %v456_v50 = vmax.f32 %v454_v49, 0.0 }
 0x414   :  { %458 = vst.msk [vmem:[#allocation5 + $0x8] sm:$0xff] %vm25_vm0, %v456_v50 }
 0x415   :  { %579 = shalt.err (!%p576_p12)
}
 0x416   :  { %s580_s24 = scalar_lea.hbm %s734_s1, 256 }
 0x417   :  { %p581_p13 = scmp.ne.s32.totalorder %s734_s1, %s580_s24  ;;  %p584_p0 = scmp.lt.u32.totalorder %s580_s24, %s734_s1 }
 0x419   :  { %p586_p1 = pnand %p584_p0, %p581_p13 }
 0x41b   :  { %589 = shalt.err (!%p586_p1)
}
 0x41c   :  { %470 = dma.vmem_to_hbm [thread:$0]  %s465_s20, 256, %s734_s1, [#allocation4], %s595_s16, %s595_s16, %s596_s17  }
 0x41d   :  { %592 = dma.done.wait [#allocation4], 256  }
 0x41e   :  { %593 = vsyncadd [#allocation4], 4294967040 }
 0x41f   :  { %474 = vsyncpa [#allocation3], 1 }
 0x420   :  { %475 = vsyncpa [#allocation4], 1 }

</bundles_post_ra>
